<compile_context>
chip_gen: v7x
topology: tpu7x:2x2x1
jax: 0.10.0
libtpu: 0.0.40
codegen_flags: <defaults>
</compile_context>

<pallas_src>
import functools

import jax
import jax.numpy as jnp
from jax import lax
from jax.experimental import pallas as pl
from jax.experimental.pallas import tpu as pltpu


def _round_up(x, m):
    return ((x + m - 1) // m) * m


def _vq_kernel(lat_ref, cb_ref, c2h_ref, q_ref, ind_ref, loss_ref, acc_ref,
               *, n_valid, inv_denom):
    i = pl.program_id(0)
    tm = lat_ref.shape[0]

    @pl.when(i == 0)
    def _init():
        acc_ref[...] = jnp.zeros_like(acc_ref)

    lat = lat_ref[...]            # (TM, D) f32
    cb = cb_ref[...]              # (D, K)  f32 (resident)
    c2h = c2h_ref[...]            # (1, K)  f32 = 0.5 * sum_d codebook^2 (precomputed)

    # argmin_k( ||x||^2 - 2 x.c_k + ||c_k||^2 ) == argmin_k( 0.5*||c_k||^2 - x.c_k )
    scores = jnp.dot(lat, cb, preferred_element_type=jnp.float32)     # (TM, K) MXU
    dist = c2h - scores                                               # (TM, K) VPU

    k = dist.shape[1]
    ids = lax.broadcasted_iota(jnp.int32, dist.shape, 1)              # (TM, K)
    min_d = jnp.min(dist, axis=1, keepdims=True)                      # (TM, 1)
    # First index achieving the min (tie-break = lowest index, matches torch).
    ind = jnp.min(jnp.where(dist == min_d, ids, k), axis=1, keepdims=True)  # (TM,1) i32

    # Gather-free codebook lookup: one_hot contracted with codebook over K on the
    # MXU (dot_general avoids materializing codebook.T).
    onehot = (ids == ind).astype(jnp.float32)                         # (TM, K)
    quant = lax.dot_general(onehot, cb, (((1,), (1,)), ((), ())),
                            preferred_element_type=jnp.float32)       # (TM, D)

    q_ref[...] = quant.astype(q_ref.dtype)
    ind_ref[...] = ind

    # Fused vq_loss: masked partial sum of squared error (padding rows excluded).
    row = lax.broadcasted_iota(jnp.int32, (tm, 1), 0) + i * tm
    valid = (row < n_valid).astype(jnp.float32)                       # (TM, 1)
    diff = quant - lat
    acc_ref[...] += jnp.sum(diff * diff * valid, keepdims=True)

    @pl.when(i == pl.num_programs(0) - 1)
    def _fin():
        loss_ref[...] = (acc_ref[...] * inv_denom).astype(loss_ref.dtype)


def vector_quantize(latents, codebook, *, block_rows=256):
    """Inference forward of VectorQuantizer.

    latents : (..., D) float latents (flattened internally, like flatten=True)
    codebook: (D, K)   float32 codebook
    Returns (quantize, vq_loss, codebook_ind) matching the PyTorch forward values.
    """
    d = latents.shape[-1]
    k = codebook.shape[1]
    cb = codebook.astype(jnp.float32)
    flat = latents.reshape(-1, d).astype(jnp.float32)
    m = flat.shape[0]

    # Row-tile size: big tiles for real shapes, sublane-aligned for tiny demos.
    tm = block_rows if m >= block_rows else _round_up(m, 8)
    m_pad = _round_up(m, tm)
    flat_p = jnp.pad(flat, ((0, m_pad - m), (0, 0))) if m_pad != m else flat

    c2h = 0.5 * jnp.sum(cb * cb, axis=0, keepdims=True)               # (1, K)

    n_tiles = m_pad // tm
    kernel = functools.partial(_vq_kernel, n_valid=m,
                               inv_denom=1.0 / float(m * d))

    cost = pl.CostEstimate(
        flops=4 * m_pad * d * k,                  # scores matmul + one-hot matmul
        transcendentals=0,
        bytes_accessed=4 * (2 * m_pad * d + d * k + k + m_pad + 1),
    )

    q_pad, ind_pad, loss = pl.pallas_call(
        kernel,
        out_shape=(
            jax.ShapeDtypeStruct((m_pad, d), jnp.float32),            # quantize
            jax.ShapeDtypeStruct((m_pad, 1), jnp.int32),              # indices
            jax.ShapeDtypeStruct((1, 1), jnp.float32),                # vq_loss
        ),
        grid_spec=pltpu.PrefetchScalarGridSpec(
            num_scalar_prefetch=0,
            grid=(n_tiles,),
            in_specs=[
                pl.BlockSpec((tm, d), lambda i: (i, 0)),              # latents tile
                pl.BlockSpec((d, k), lambda i: (0, 0)),               # codebook (resident)
                pl.BlockSpec((1, k), lambda i: (0, 0)),               # 0.5*||c||^2 (resident)
            ],
            out_specs=[
                pl.BlockSpec((tm, d), lambda i: (i, 0)),
                pl.BlockSpec((tm, 1), lambda i: (i, 0)),
                pl.BlockSpec((1, 1), lambda i: (0, 0)),
            ],
            scratch_shapes=[pltpu.VMEM((1, 1), jnp.float32)],         # loss accumulator
        ),
        compiler_params=pltpu.CompilerParams(
            # The loss accumulator / loss output are resident across the row axis,
            # so the single grid axis must be sequential.
            dimension_semantics=("arbitrary",),
        ),
        cost_estimate=cost,
    )(flat_p, cb, c2h)

    quantize = q_pad[:m].reshape(latents.shape).astype(latents.dtype)
    codebook_ind = ind_pad[:m, 0].reshape(latents.shape[:-1])
    vq_loss = loss[0, 0]
    return quantize, vq_loss, codebook_ind


def vector_quantize_ref(latents, codebook):
    """Pure-JAX reference mirroring the PyTorch forward (eval, ema=True)."""
    d = codebook.shape[0]
    flat = latents.reshape(-1, d)
    dist = (jnp.sum(flat ** 2, axis=1, keepdims=True)
            - 2.0 * flat @ codebook
            + jnp.sum(codebook ** 2, axis=0, keepdims=True))
    ind = jnp.argmax(-dist, axis=1)
    quant = codebook.T[ind]
    vq_loss = jnp.mean((quant - flat) ** 2)
    return quant.reshape(latents.shape), vq_loss, ind.reshape(latents.shape[:-1])


if __name__ == "__main__":
    key = jax.random.PRNGKey(0)
    k_lat, k_cb = jax.random.split(key)

    num_embeddings = 64   # n_embed (K)
    embedding_dim = 32    # dim (D)
    batch, seq = 2, 8
    m = batch * seq

    latents = jax.random.normal(k_lat, (m, embedding_dim), dtype=jnp.float32)
    # torch.nn.init.uniform_(codebook, a=-1/n_embed, b=1/n_embed)
    codebook = jax.random.uniform(
        k_cb, (embedding_dim, num_embeddings), dtype=jnp.float32,
        minval=-1.0 / num_embeddings, maxval=1.0 / num_embeddings)

    # block_rows=8 -> 2 grid steps at this demo size, exercising the tiled
    # pipeline and the fused loss accumulator (default 256 for real shapes).
    quant, vq_loss, ind = vector_quantize(latents, codebook, block_rows=8)
    quant = jax.block_until_ready(quant)
    vq_loss = jax.block_until_ready(vq_loss)
    ind = jax.block_until_ready(ind)

    q_ref, l_ref, i_ref = vector_quantize_ref(latents, codebook)

    assert quant.shape == latents.shape
    assert ind.shape == (m,)
    assert jnp.array_equal(ind, i_ref), "codebook indices mismatch"
    assert jnp.allclose(quant, q_ref, atol=1e-5, rtol=1e-5), "quantize mismatch"
    assert jnp.allclose(vq_loss, l_ref, atol=1e-5, rtol=1e-5), "vq_loss mismatch"

    print("KERNEL_OK")
</pallas_src>

<mosaic_0001>
module attributes {stable_mosaic.version = 11 : i64} {
  func.func @_vq_kernel(%arg0: i32, %arg1: memref<8x32xf32, #tpu.memory_space<vmem>>, %arg2: memref<32x64xf32, #tpu.memory_space<vmem>>, %arg3: memref<1x64xf32, #tpu.memory_space<vmem>>, %arg4: memref<8x32xf32, #tpu.memory_space<vmem>>, %arg5: memref<8x1xi32, #tpu.memory_space<vmem>>, %arg6: memref<1x1xf32, #tpu.memory_space<vmem>>, %arg7: memref<1x1xf32, #tpu.memory_space<vmem>>) attributes {dimension_semantics = [#tpu.dimension_semantics<arbitrary>], iteration_bounds = array<i64: 2>, scalar_prefetch = 0 : i64, scratch_operands = 1 : i64, tpu.core_type = #tpu.core_type<tc>, window_params = [{transform_indices = @transform_0, window_bounds = array<i64: 8, 32>}, {pipeline_mode = #tpu.pipeline_mode<synchronous>, transform_indices = @transform_1, window_bounds = array<i64: 32, 64>}, {pipeline_mode = #tpu.pipeline_mode<synchronous>, transform_indices = @transform_2, window_bounds = array<i64: 1, 64>}, {transform_indices = @transform_3, window_bounds = array<i64: 8, 32>}, {transform_indices = @transform_4, window_bounds = array<i64: 8, 1>}, {pipeline_mode = #tpu.pipeline_mode<synchronous>, transform_indices = @transform_5, window_bounds = array<i64: 1, 1>}]} {
    %c0_i32 = arith.constant 0 : i32
    %0 = arith.cmpi eq, %arg0, %c0_i32 : i32
    %1 = arith.extui %0 : i1 to i32
    %c0_i32_0 = arith.constant 0 : i32
    %2 = arith.cmpi ne, %1, %c0_i32_0 : i32
    scf.if %2 {
      %cst_19 = arith.constant 0.000000e+00 : f32
      %48 = vector.broadcast %cst_19 : f32 to vector<1x1xf32>
      %c0_20 = arith.constant 0 : index
      %c0_21 = arith.constant 0 : index
      %49 = vector.load %arg7[%c0_20, %c0_21] : memref<1x1xf32, #tpu.memory_space<vmem>>, vector<1x1xf32>
      tpu.vector_store %arg7[%c0_20, %c0_21], %48 {strides = array<i32>} : memref<1x1xf32, #tpu.memory_space<vmem>>, vector<1x1xf32>,
    } else {
    }
    %c0 = arith.constant 0 : index
    %c0_1 = arith.constant 0 : index
    %3 = vector.load %arg1[%c0, %c0_1] : memref<8x32xf32, #tpu.memory_space<vmem>>, vector<8x32xf32>
    %c0_2 = arith.constant 0 : index
    %c0_3 = arith.constant 0 : index
    %4 = vector.load %arg2[%c0_2, %c0_3] : memref<32x64xf32, #tpu.memory_space<vmem>>, vector<32x64xf32>
    %c0_4 = arith.constant 0 : index
    %c0_5 = arith.constant 0 : index
    %5 = vector.load %arg3[%c0_4, %c0_5] : memref<1x64xf32, #tpu.memory_space<vmem>>, vector<1x64xf32>
    %cst = arith.constant dense<0.000000e+00> : vector<8x64xf32>
    %6 = tpu.matmul %3, %4, %cst {dimension_numbers = #tpu.dot_dimension_numbers<[1], [0], [0], [1], [0, 0, 1, 1], [], []>} : vector<8x32xf32>, vector<32x64xf32>, vector<8x64xf32> -> vector<8x64xf32>
    %7 = vector.broadcast %5 : vector<1x64xf32> to vector<8x64xf32>
    %8 = arith.subf %7, %6 : vector<8x64xf32>
    %9 = tpu.iota {dimensions = array<i32: 1>} : vector<8x64xi32>
    %cst_6 = arith.constant dense<0x7F800000> : vector<8xf32>
    %10 = vector.multi_reduction <minimumf>, %8, %cst_6 [1] : vector<8x64xf32> to vector<8xf32>
    %11 = vector.shape_cast %10 : vector<8xf32> to vector<8x1xf32>
    %12 = vector.broadcast %11 : vector<8x1xf32> to vector<8x64xf32>
    %13 = arith.cmpf oeq, %8, %12 : vector<8x64xf32>
    %c64_i32 = arith.constant 64 : i32
    %14 = vector.broadcast %c64_i32 : i32 to vector<8x64xi32>
    %15 = arith.select %13, %9, %14 : vector<8x64xi1>, vector<8x64xi32>
    %cst_7 = arith.constant dense<2147483647> : vector<8xi32>
    %16 = vector.multi_reduction <minsi>, %15, %cst_7 [1] : vector<8x64xi32> to vector<8xi32>
    %17 = vector.shape_cast %16 : vector<8xi32> to vector<8x1xi32>
    %18 = vector.broadcast %17 : vector<8x1xi32> to vector<8x64xi32>
    %19 = arith.cmpi eq, %9, %18 : vector<8x64xi32>
    %20 = arith.extui %19 : vector<8x64xi1> to vector<8x64xi32>
    %21 = arith.sitofp %20 : vector<8x64xi32> to vector<8x64xf32>
    %cst_8 = arith.constant dense<0.000000e+00> : vector<8x32xf32>
    %22 = tpu.matmul %21, %4, %cst_8 {dimension_numbers = #tpu.dot_dimension_numbers<[1], [1], [0], [0], [0, 0, 1, 0], [], []>} : vector<8x64xf32>, vector<32x64xf32>, vector<8x32xf32> -> vector<8x32xf32>
    %c0_9 = arith.constant 0 : index
    %c0_10 = arith.constant 0 : index
    %23 = vector.load %arg4[%c0_9, %c0_10] : memref<8x32xf32, #tpu.memory_space<vmem>>, vector<8x32xf32>
    tpu.vector_store %arg4[%c0_9, %c0_10], %22 {strides = array<i32>} : memref<8x32xf32, #tpu.memory_space<vmem>>, vector<8x32xf32>,
    %c0_11 = arith.constant 0 : index
    %c0_12 = arith.constant 0 : index
    %24 = vector.load %arg5[%c0_11, %c0_12] : memref<8x1xi32, #tpu.memory_space<vmem>>, vector<8x1xi32>
    tpu.vector_store %arg5[%c0_11, %c0_12], %17 {strides = array<i32>} : memref<8x1xi32, #tpu.memory_space<vmem>>, vector<8x1xi32>,
    %25 = tpu.iota {dimensions = array<i32: 0>} : vector<8x1xi32>
    %c8_i32 = arith.constant 8 : i32
    %26 = arith.muli %arg0, %c8_i32 : i32
    %27 = vector.broadcast %26 : i32 to vector<8x1xi32>
    %28 = arith.addi %25, %27 : vector<8x1xi32>
    %c16_i32 = arith.constant 16 : i32
    %29 = vector.broadcast %c16_i32 : i32 to vector<8x1xi32>
    %30 = arith.cmpi slt, %28, %29 : vector<8x1xi32>
    %31 = arith.extui %30 : vector<8x1xi1> to vector<8x1xi32>
    %32 = arith.sitofp %31 : vector<8x1xi32> to vector<8x1xf32>
    %33 = arith.subf %22, %3 : vector<8x32xf32>
    %c0_13 = arith.constant 0 : index
    %c0_14 = arith.constant 0 : index
    %34 = vector.load %arg7[%c0_13, %c0_14] : memref<1x1xf32, #tpu.memory_space<vmem>>, vector<1x1xf32>
    %35 = arith.mulf %33, %33 : vector<8x32xf32>
    %36 = vector.broadcast %32 : vector<8x1xf32> to vector<8x32xf32>
    %37 = arith.mulf %35, %36 : vector<8x32xf32>
    %38 = vector.shape_cast %37 : vector<8x32xf32> to vector<1x8x32xf32>
    %cst_15 = arith.constant dense<0.000000e+00> : vector<1xf32>
    %39 = vector.multi_reduction <add>, %38, %cst_15 [1, 2] : vector<1x8x32xf32> to vector<1xf32>
    %40 = vector.shape_cast %39 : vector<1xf32> to vector<1x1x1xf32>
    %41 = vector.extract %40[0, 0, 0] : f32 from vector<1x1x1xf32>
    %42 = vector.broadcast %41 : f32 to vector<1x1xf32>
    %43 = arith.addf %34, %42 : vector<1x1xf32>
    %c0_16 = arith.constant 0 : index
    %c0_17 = arith.constant 0 : index
    %44 = vector.load %arg7[%c0_16, %c0_17] : memref<1x1xf32, #tpu.memory_space<vmem>>, vector<1x1xf32>
    tpu.vector_store %arg7[%c0_16, %c0_17], %43 {strides = array<i32>} : memref<1x1xf32, #tpu.memory_space<vmem>>, vector<1x1xf32>,
    %c1_i32 = arith.constant 1 : i32
    %45 = arith.cmpi eq, %arg0, %c1_i32 : i32
    %46 = arith.extui %45 : i1 to i32
    %c0_i32_18 = arith.constant 0 : i32
    %47 = arith.cmpi ne, %46, %c0_i32_18 : i32
    scf.if %47 {
      %c0_19 = arith.constant 0 : index
      %c0_20 = arith.constant 0 : index
      %48 = vector.load %arg7[%c0_19, %c0_20] : memref<1x1xf32, #tpu.memory_space<vmem>>, vector<1x1xf32>
      %cst_21 = arith.constant 0.001953125 : f32
      %49 = vector.broadcast %cst_21 : f32 to vector<1x1xf32>
      %50 = arith.mulf %48, %49 : vector<1x1xf32>
      %c0_22 = arith.constant 0 : index
      %c0_23 = arith.constant 0 : index
      %51 = vector.load %arg6[%c0_22, %c0_23] : memref<1x1xf32, #tpu.memory_space<vmem>>, vector<1x1xf32>
      tpu.vector_store %arg6[%c0_22, %c0_23], %50 {strides = array<i32>} : memref<1x1xf32, #tpu.memory_space<vmem>>, vector<1x1xf32>,
    } else {
    }
    return
  }
  func.func @transform_0(%arg0: i32) -> (i32, i32) {
    %c0_i32 = arith.constant 0 : i32
    %c0_i32_0 = arith.constant 0 : i32
    return %arg0, %c0_i32 : i32, i32
  }
  func.func @transform_1(%arg0: i32) -> (i32, i32) {
    %c0_i32 = arith.constant 0 : i32
    %c0_i32_0 = arith.constant 0 : i32
    %c0_i32_1 = arith.constant 0 : i32
    return %c0_i32, %c0_i32_0 : i32, i32
  }
  func.func @transform_2(%arg0: i32) -> (i32, i32) {
    %c0_i32 = arith.constant 0 : i32
    %c0_i32_0 = arith.constant 0 : i32
    %c0_i32_1 = arith.constant 0 : i32
    return %c0_i32, %c0_i32_0 : i32, i32
  }
  func.func @transform_3(%arg0: i32) -> (i32, i32) {
    %c0_i32 = arith.constant 0 : i32
    %c0_i32_0 = arith.constant 0 : i32
    return %arg0, %c0_i32 : i32, i32
  }
  func.func @transform_4(%arg0: i32) -> (i32, i32) {
    %c0_i32 = arith.constant 0 : i32
    %c0_i32_0 = arith.constant 0 : i32
    return %arg0, %c0_i32 : i32, i32
  }
  func.func @transform_5(%arg0: i32) -> (i32, i32) {
    %c0_i32 = arith.constant 0 : i32
    %c0_i32_0 = arith.constant 0 : i32
    %c0_i32_1 = arith.constant 0 : i32
    return %c0_i32, %c0_i32_0 : i32, i32
  }
}

</mosaic_0001>

<bundles_post_ra>
// kernel: tpu_custom_call.1
= control target key start
LH: loop header
LB: loop body
LE: loop exit
PB: predicated region body
PF: predicated region fallthrough
CT: control target
= control target key end

     0   :  { %11 = vsyncpa [#allocation4], 0  ;;  %s1241_s0 = inlined_call_operand.hbm [shape: f32[16,32], index: 0, kind: input, shape index: {}]   ;;  %s1242_s1 = inlined_call_operand.hbm [shape: f32[32,64], index: 1, kind: input, shape index: {}]   ;;  %s1243_s2 = inlined_call_operand.vmem [shape: f32[1,64], index: 2, kind: input, shape index: {}]   ;;  %s1244_s3 = inlined_call_operand.hbm [shape: f32[16,32], index: 3, kind: output, shape index: {0}]   ;;  %s1245_s4 = inlined_call_operand.vmem [shape: s32[16,1], index: 4, kind: output, shape index: {1}]   ;;  %s1246_s5 = inlined_call_operand.hbm [shape: f32[1,1], index: 5, kind: output, shape index: {2}]  }
   0x1   :  { %13 = vsyncpa [#allocation4 + $0x1], 0 }
   0x2   :  { %14 = vsyncpa [#allocation7], 0 }
   0x3   :  { %15 = vsyncpa [#allocation5], 0 }
   0x4   :  { %17 = vsyncpa [#allocation5 + $0x1], 0 }
   0x5   :  { %18 = vsyncpa [#allocation10], 0  ;;  %s998_s18 = smov 0   ;;  %s1000_s19 = smov 0  }
   0x6   :  { %s1002_s20 = smov 0   ;;  %s1004_s21 = smov 0  }
   0x7 LB: > { %s1019_s22 = sadd.s32 4294967295, %s956_s21   ;;  %s651_s23 = sadd.s32 4294967294, %s956_s21   ;;  %s956_s21 = sphi %s1004_s21, %s1272_s21   ;;  %s952_s20 = sphi %s1002_s20, %s1271_s20   ;;  %s948_s19 = sphi %s1000_s19, %s1270_s19   ;;  %s944_s18 = sphi %s998_s18, %s1269_s18  }
   0x8   : > { %p44_p0 = scmp.ne.s32.totalorder %s948_s19, %s944_s18  ;;  %p1247_p1 = scmp.eq.s32.totalorder %s1019_s22, 0 }
   0x9   : > { %p116_p3 = scmp.eq.s32.totalorder %s651_s23, 1  ;;  %p652_p5 = scmp.ge.s32.totalorder %s956_s21, 1 }
   0xa   : > { %p1028_p4 = por %p1247_p1, %p44_p0  ;;  %p170_p7 = scmp.lt.s32.totalorder %s956_s21, 3 }
   0xb   : > { %p1033_p6 = por %p116_p3, %p44_p0  ;;  %s958_s27 = smov [#allocation6]  }
   0xc   : > { %s1250_s24 = scalar_select %p1028_p4, 1, 0 }
   0xd   : > { %s1251_s25 = scalar_select %p1033_p6, 1, 0 }
   0xe   : > { %p1039_p9 = pnand %p652_p5, %p170_p7  ;;  %s182_s28 = sshll.u32 %s958_s27, 4  ;;  %s1043_s28 = int_to_ptr.vmem [resolvable:$true] %s182_s28 }
   0xf   : > { %s1055_s30 = sadd.s32 1, %s956_s21   ;;  %s31_s6 = sadd.s32 1, %s952_s20 }
  0x10   : > { %s1252_s26 = scalar_select %p1039_p9, 1, 0 }
  0x11   : > { %p740_p10 = pneg %p1039_p9  ;;  %s28_s7 = ssub.s32 %s956_s21, %s1055_s30 }
  0x12   : > { %s798_s10 = scalar_lea.hbm %s1242_s1, 512 }
  0x13   : > { %p1050_p12 = pnand %p740_p10, %p1247_p1  ;;  %p799_p13 = scmp.ne.s32.totalorder %s1242_s1, %s798_s10 }
  0x14   : > { %p805_p7 = scmp.lt.u32.totalorder %s798_s10, %s1242_s1 }
  0x15   : > { %p800_p0 = pneg %p1050_p12 }
  0x17   : > { %p801_p3 = pnand %p800_p0, %p799_p13 }
  0x19   : > { %p802_p5 = pneg %p801_p3 }
  0x1b   : > { %p807_p10 = pnand %p805_p7, %p802_p5 }
  0x1d   : > { %810 = shalt.err (!%p807_p10)
}
  0x1e   : > { %s811_s15 = scalar_lea.vmem %s1043_s28, 512  ;;  %p819_p2 = scmp.lt.s32.totalorder %s1043_s28, %s1043_s28 }
  0x1f   : > { %p812_p11 = scmp.ne.s32.totalorder %s1043_s28, %s811_s15  ;;  %p820_p6 = scmp.lt.s32.totalorder %s811_s15, %s811_s15 }
  0x21   : > { %p814_p8 = pnand %p812_p11, %p800_p0  ;;  %p821_p4 = por %p820_p6, %p819_p2 }
  0x23   : > { %p815_p1 = pneg %p814_p8 }
  0x25   : > { %p822_p9 = pnand %p821_p4, %p815_p1 }
  0x27   : > { %825 = shalt.err (!%p822_p9)
}
  0x28   : > { %s959_s16 = smov 128   ;;  %s960_s17 = smov 8  }
  0x29   : > { %743 = dma.hbm_to_vmem [thread:$0]  (!%p1050_p12), %s1242_s1, 512, %s1043_s28, [#allocation7], %s959_s16, %s959_s16, %s960_s17  }
  0x2a   : > { %p29_p2 = scmp.eq.s32.totalorder %s28_s7, 0  ;;  %p38_p1 = scmp.ne.s32.totalorder %s952_s20, %s948_s19 }
  0x2b   : > { %p39_p4 = scmp.eq.s32.totalorder %s956_s21, 0  ;;  %p753_p6 = scmp.lt.s32.totalorder %s956_s21, 2 }
  0x2c   : > { %s1086_s8 = scalar_select %p29_p2, %s952_s20, %s31_s6  }
  0x2d   : > { %p40_p8 = por %p39_p4, %p38_p1  ;;  %p1254_p9 = scmp.eq.s32.totalorder %s1019_s22, 1 }
  0x2e   : > { %s199_s10 = sand.u32 1, %s952_s20   ;;  %s656_s11 = sshll.u32 %s956_s21, 7 }
  0x2f   : > { %p1090_p11 = por %p1254_p9, %p38_p1  ;;  %s655_s12 = sshll.u32 %s199_s10, 3 }
  0x30   : > { %s1099_s14 = scalar_lea.hbm %s1241_s0, %s656_s11  ;;  %s203_s28 = scalar_lea.vmem [#allocation3], %s655_s12 }
  0x31   : > { %s210_s6 = sshll.u32 %s203_s28, 4  ;;  %p1101_p12 = pnand %p753_p6, %p40_p8  ;;  %s1105_s6 = int_to_ptr.vmem [resolvable:$true] %s210_s6 }
  0x32   : > { %s200_s15 = scalar_lea.sflag [#allocation4], %s199_s10  ;;  %s826_s16 = scalar_lea.hbm %s1099_s14, 128 }
  0x33   : > { %p827_p13 = scmp.ne.s32.totalorder %s1099_s14, %s826_s16  ;;  %p828_p0 = pneg %p1101_p12 }
  0x34   : > { %s831_s27 = scalar_lea.hbm %s1241_s0, 256  ;;  %p832_p7 = scmp.lt.u32.totalorder %s1099_s14, %s1241_s0 }
  0x35   : > { %p829_p3 = pnand %p828_p0, %p827_p13  ;;  %p833_p10 = scmp.lt.u32.totalorder %s831_s27, %s826_s16 }
  0x36   : > { %p835_p1 = scmp.lt.u32.totalorder %s826_s16, %s1099_s14 }
  0x37   : > { %p830_p5 = pneg %p829_p3  ;;  %p834_p2 = por %p833_p10, %p832_p7 }
  0x39   : > { %p836_p4 = por %p835_p1, %p834_p2 }
  0x3b   : > { %p837_p6 = pnand %p836_p4, %p830_p5 }
  0x3d   : > { %840 = shalt.err (!%p837_p6)
}
  0x3e   : > { %s841_s10 = scalar_lea.vmem %s1105_s6, 128  ;;  %s961_s29 = smov [#allocation3]  }
  0x3f   : > { %p842_p8 = scmp.ne.s32.totalorder %s1105_s6, %s841_s10  ;;  %s846_s13 = sshll.u32 %s961_s29, 4  ;;  %s847_s13 = int_to_ptr.vmem [resolvable:$false] %s846_s13 }
  0x40   : > { %s848_s28 = scalar_lea.vmem %s847_s13, 256  ;;  %p849_p3 = scmp.lt.s32.totalorder %s1105_s6, %s847_s13 }
  0x41   : > { %p844_p9 = pnand %p842_p8, %p828_p0  ;;  %p850_p7 = scmp.lt.s32.totalorder %s848_s28, %s841_s10 }
  0x43   : > { %p845_p13 = pneg %p844_p9  ;;  %p851_p10 = por %p850_p7, %p849_p3 }
  0x45   : > { %p852_p2 = pnand %p851_p10, %p845_p13 }
  0x47   : > { %855 = shalt.err (!%p852_p2)
}
  0x48   : > { %747 = dma.hbm_to_vmem [thread:$0]  (!%p1101_p12), %s1099_s14, 128, %s1105_s6, %s200_s15  }
  0x49   : > { %p1257_p5 = scmp.ne.s32.totalorder %s1252_s26, 0 }
  0x4a   : > { %s1135_s16 = sand.u32 (!%p1257_p5), 1, %s948_s19   ;;  %p1258_p0 = scmp.ne.s32.totalorder (!%p1257_p5), %s1250_s24, 0 }
  0x4b   : > { %219 = sbr.rel (%p1257_p5) target bundleno = 1251 (0x4e3), region = 32  ;;  %s658_s17 = sshll.u32 (!%p1257_p5), %s1135_s16, 3 }
  0x4c   : > { %s222_s23 = scalar_lea.sflag (!%p1257_p5), [#allocation4], %s1135_s16  ;;  %s1139_s27 = scalar_lea.vmem (!%p1257_p5), [#allocation3], %s658_s17 }
  0x52   : > { %927 = dma.done.wait (%p1258_p0), %s222_s23, 128  }
  0x53   : > { %929 = vsyncadd (%p1258_p0), %s222_s23, 4294967168  ;;  %p1259_p12 = scmp.eq.s32.totalorder %s1019_s22, 0 }
  0x55   : > { %931 = dma.done.wait (%p1259_p12), [#allocation7], 512   ;;  %p1260_p1 = pmov %p1259_p12 }
  0x56   : > { %p260_p4 = scmp.lt.s32.totalorder %s1019_s22, 1  ;;  %s1156_s11 = scalar_lea.vmem [#allocation8], %s658_s17 }
  0x57   : > { %933 = vsyncadd (%p1260_p1), [#allocation7], 4294966784  ;;  %p1261_p6 = scmp.ne.s32.totalorder %s1019_s22, 0 }
  0x58   : > { %s261_s26 = scalar_select %p260_p4, %s1019_s22, 1 }
  0x59   : > { %267 = sbr.rel (%p1261_p6) target bundleno = 96 (0x60), region = 44  ;;  %vm268_vm0 = vcmask (!%p1261_p6), 0   ;;  %v962_v0 = vmov (!%p1261_p6), 0.0  }
  0x5a   : > { %s661_s14 = sshll.u32 %s261_s26, 3  ;;  %269 = vst.msk [vmem:[#allocation2] sm:$0x1] (!%p1261_p6), %vm268_vm0, %v962_v0 }
  0x5b   : > { %s1154_s15 = scalar_lea.vmem %s1245_s4, %s661_s14 }
  0x60 PF: > { %v271_v1 = vld [vmem:[#allocation6] sm:$0xff]  ;;  %v272_v2 = vld [vmem:[#allocation6 + $0x8] sm:$0xff]  ;;  %v273_v3 = vld [vmem:[#allocation6 + $0x10] sm:$0xff]  ;;  %v963_v4 = vmov 0.0|0.0   ;;  %vm964_vm1 = vmmov 0   ;;  %v965_v7 = vmov 0.0   ;;  %v357_v15 = vlaneseq }
  0x61   : > { %712 = vmatprep.subr.bf16.mxu0 %v963_v4  ;;  %v713_v5 = vpack.c.bf16 %v272_v2, %v271_v1  ;;  %v274_v6 = vld [vmem:[#allocation6 + $0x18] sm:$0xff]  ;;  %698 = vmatprep.mubr.msk.f32.mxu0 %vm964_vm1, %v965_v7  ;;  %vm276_vm2 = vcmask 261120   ;;  %v664_v10 = vld [vmem:[%s1243_s2] ss:$0 sm:$0xff]  ;;  %vm359_vm3 = vcmask 523264   ;;  %vm469_vm7 = vcmask 7168  }
  0x62   : > { %718 = vmatprep.subr.bf16.mxu1 %v963_v4  ;;  %709 = vmatprep.mubr.msk.f32.mxu1 %vm964_vm1, %v965_v7  ;;  %v716_v8 = vpack.c.bf16 %v274_v6, %v273_v3  ;;  %v270_v9 = vld [vmem:[%s1139_s27] sm:$0xff]  ;;  %v358_v16 = vand.u32 127, %v357_v15  ;;  %vm720_vm5 = vmpackc.low %vm359_vm3, %vm359_vm3  ;;  %s671_s10 = sshll.u32 %s1019_s22, 3  ;;  %v472_v32 = vshrl.u32 %v357_v15, 7  ;;  %v480_v49 = vld [vmem:[#allocation2] sm:$0x1] }
  0x63   : > { %714 = vmatpush3.bf16.msra.mxu0 %v713_v5  ;;  %721 = vmatpush3.bf16.xpose.msk.msra.mxu1 %vm720_vm5, %v713_v5  ;;  %v474_v33 = vstv %s671_s10  ;;  %vm495_vm10 = vcmask 0   ;;  %p673_p8 = scmp.ne.s32.totalorder %s1019_s22, 1 }
  0x64   : > { %715 = vmatprep.subr.bf16.mxu0 %v963_v4  ;;  %722 = vmatprep.subr.bf16.mxu1 %v963_v4  ;;  %v475_v34 = vadd.s32 %v474_v33, %v472_v32 }
  0x66   : > { %vm476_vm9 = vcmp.lt.s32.totalorder %v475_v34, 16 }
  0x67   : > { %717 = vmatpush3.bf16.msra.mxu0 %v716_v8  ;;  %v672_v38 = vsel %vm476_vm9, 1.0, %v965_v7 }
  0x6a   : > { %699 = vmatmul.mubr.msk.f32.vlgmr.msra.gmra.mrb[0].mxu0 %vm276_vm2, %v270_v9 }
  0x6b   : > { %725 = vmatpush3.bf16.xpose.msk.msra.mxu1 %vm720_vm5, %v716_v8 }
 0x13d   : > { %v346_v11 = vpop.f32.mrb[0].mxu0 }
 0x13e   : > { %v356_v12 = vsub.f32 %v664_v10, %v346_v11  ;;  %v700_v13 = vpop.f32.mrb[1].mxu0 }
 0x140   : > { %v360_v14 = vsel %vm359_vm3, %v356_v12, inf }
 0x141   : > { %361 = vmin.xlane.f32.xlu0 %v360_v14 }
 0x1ce   : > { %v362_v17 = vpop.xlane.xlu0 %361 }
 0x1cf   : > { %vm363_vm4 = vcmp.eq.f32.partialorder %v356_v12, %v362_v17 }
 0x1d0   : > { %v364_v18 = vsel %vm363_vm4, %v358_v16, 64 }
 0x1d1   : > { %v365_v19 = vsel %vm359_vm3, %v364_v18, 2147483647 }
 0x1d2   : > { %v367_v20 = vshra.s32 %v365_v19, 16  ;;  %v366_v22 = vand.u32 65535, %v365_v19 }
 0x1d4   : > { %v369_v21 = vcvt.s32.f32 %v367_v20  ;;  %v368_v24 = vcvt.s32.f32 %v366_v22 }
 0x1d6   : > { %370 = vmin.xlane.f32.xlu0 %v369_v21 }
 0x263   : > { %v371_v23 = vpop.xlane.xlu0 %370 }
 0x264   : > { %vm372_vm6 = vcmp.eq.f32.partialorder %v369_v21, %v371_v23  ;;  %v377_v26 = vcvt.f32.s32 %v371_v23 }
 0x265   : > { %v373_v25 = vsel %vm372_vm6, %v368_v24, inf }
 0x266   : > { %374 = vmin.xlane.f32.xlu1 %v373_v25  ;;  %v378_v28 = vshll.u32 %v377_v26, 16 }
 0x2f3   : > { %v375_v27 = vpop.xlane.xlu1 %374 }
 0x2f4   : > { %v376_v29 = vcvt.f32.s32 %v375_v27 }
 0x2f6   : > { %v379_v30 = vadd.s32 %v378_v28, %v376_v29 }
 0x2f8   : > { %470 = vst.msk [vmem:[%s1154_s15] sm:$0xff] %vm469_vm7, %v379_v30  ;;  %vm380_vm8 = vcmp.eq.s32.totalorder %v358_v16, %v379_v30 }
 0x2f9   : > { %v665_v31 = vsel %vm380_vm8, 1.0, %v965_v7 }
 0x2fa   : > { %710 = vmatmul.mubr.msk.f32.vlgmr.msra.gmra.mrb[0].mxu1 %vm359_vm3, %v665_v31 }
 0x3cd   : > { %v464_v35 = vpop.f32.mrb[0].mxu1 }
 0x3ce   : > { %468 = vst.msk [vmem:[%s1156_s11] sm:$0xff] %vm276_vm2, %v464_v35  ;;  %v479_v36 = vsub.f32 %v464_v35, %v270_v9  ;;  %v711_v37 = vpop.f32.mrb[1].mxu1 }
 0x3d0   : > { %v481_v39 = vmul.f32 %v479_v36, %v479_v36 }
 0x3d2   : > { %v482_v40 = vmul.f32 %v672_v38, %v481_v39 }
 0x3d4   : > { %v483_v41 = vsel %vm276_vm2, %v482_v40, 0.0 }
 0x3d5   : > { %484 = vadd.xlane.f32.xlu1 %v483_v41 }
 0x462   : > { %v485_v42 = vpop.xlane.xlu1 %484 }
 0x463   : > { %v486_v43 = vrot.slane %v485_v42, 4 }
 0x465   : > { %v487_v44 = vadd.f32 %v486_v43, %v485_v42 }
 0x467   : > { %v488_v45 = vrot.slane %v487_v44, 2 }
 0x469   : > { %v489_v46 = vadd.f32 %v488_v45, %v487_v44 }
 0x46b   : > { %v490_v47 = vrot.slane %v489_v46, 1 }
 0x46d   : > { %v491_v48 = vadd.f32 %v490_v47, %v489_v46 }
 0x46f   : > { %726 = vpush %v491_v48 }
 0x49e   : > { %500 = sbr.rel (%p673_p8) target bundleno = 1199 (0x4af), region = 48 }
 0x4a0   : > { %s727_s29 = spop %726 }
 0x4a1   : > { %v493_v50 = vstv %s727_s29 }
 0x4a2   : > { %v494_v51 = vadd.f32 %v493_v50, %v480_v49 }
 0x4a4   : > { %496 = vst.msk [vmem:[#allocation2] sm:$0x1] %vm495_vm10, %v494_v51 }
 0x4ab   : > { %v501_v52 = vld [vmem:[#allocation2] sm:$0x1] }
 0x4ac   : > { %v502_v53 = vmul.f32 0.001953125, %v501_v52 }
 0x4ae   : > { %503 = vst.msk [vmem:[#allocation9] sm:$0x1] %vm495_vm10, %v502_v53 }
 0x4af PF: > { %s675_s13 = sshll.u32 %s1019_s22, 7  ;;  %s522_s27 = sshll.u32 %s1156_s11, 4  ;;  %s523_s27 = int_to_ptr.vmem [resolvable:$true] %s522_s27 }
 0x4b0   : > { %s1180_s23 = scalar_lea.hbm %s1244_s3, %s675_s13  ;;  %s505_s26 = scalar_lea.sflag [#allocation5], %s1135_s16 }
 0x4b1   : > { %s856_s14 = scalar_lea.vmem %s523_s27, 128  ;;  %s966_s6 = smov [#allocation8]  }
 0x4b2   : > { %p857_p9 = scmp.ne.s32.totalorder %s523_s27, %s856_s14  ;;  %s860_s7 = sshll.u32 %s966_s6, 4  ;;  %s861_s7 = int_to_ptr.vmem [resolvable:$false] %s860_s7 }
 0x4b3   : > { %s862_s15 = scalar_lea.vmem %s861_s7, 256  ;;  %p863_p7 = scmp.lt.s32.totalorder %s523_s27, %s861_s7 }
 0x4b4   : > { %p858_p13 = pnand %p857_p9, %p1090_p11  ;;  %p864_p10 = scmp.lt.s32.totalorder %s862_s15, %s856_s14 }
 0x4b6   : > { %p859_p3 = pneg %p858_p13  ;;  %p865_p2 = por %p864_p10, %p863_p7 }
 0x4b8   : > { %p866_p5 = pnand %p865_p2, %p859_p3 }
 0x4ba   : > { %869 = shalt.err (!%p866_p5)
}
 0x4bb   : > { %s870_s16 = scalar_lea.hbm %s1180_s23, 128  ;;  %s874_s12 = scalar_lea.hbm %s1244_s3, 256 }
 0x4bc   : > { %p871_p0 = scmp.ne.s32.totalorder %s1180_s23, %s870_s16  ;;  %p875_p4 = scmp.lt.u32.totalorder %s1180_s23, %s1244_s3 }
 0x4bd   : > { %p876_p6 = scmp.lt.u32.totalorder %s874_s12, %s870_s16  ;;  %p878_p9 = scmp.lt.u32.totalorder %s870_s16, %s1180_s23 }
 0x4be   : > { %p872_p12 = pnand %p871_p0, %p1090_p11 }
 0x4bf   : > { %p877_p8 = por %p876_p6, %p875_p4 }
 0x4c0   : > { %p873_p1 = pneg %p872_p12 }
 0x4c1   : > { %p879_p13 = por %p878_p9, %p877_p8 }
 0x4c3   : > { %p880_p3 = pnand %p879_p13, %p873_p1 }
 0x4c5   : > { %883 = shalt.err (!%p880_p3)
}
 0x4c6   : > { %734 = dma.vmem_to_hbm [thread:$0]  (%p1090_p11), %s523_s27, 128, %s1180_s23, %s505_s26  }
 0x4c7   : > { %s967_s13 = smov [#allocation9]   ;;  %p1262_p10 = scmp.eq.s32.totalorder %s1019_s22, 1 }
 0x4c8   : > { %s536_s28 = sshll.u32 %s967_s13, 4  ;;  %s537_s28 = int_to_ptr.vmem [resolvable:$true] %s536_s28 }
 0x4c9   : > { %s884_s17 = scalar_lea.vmem %s537_s28, 16  ;;  %s890_s14 = scalar_lea.vmem %s537_s28, 32 }
 0x4ca   : > { %p885_p7 = scmp.ne.s32.totalorder %s537_s28, %s884_s17  ;;  %p891_p0 = scmp.lt.s32.totalorder %s537_s28, %s537_s28 }
 0x4cb   : > { %p892_p12 = scmp.lt.s32.totalorder %s890_s14, %s884_s17 }
 0x4cc   : > { %p886_p2 = pnand %p885_p7, %p1262_p10 }
 0x4cd   : > { %p893_p4 = por %p892_p12, %p891_p0 }
 0x4ce   : > { %p887_p5 = pneg %p886_p2 }
 0x4d0   : > { %p894_p6 = pnand %p893_p4, %p887_p5 }
 0x4d2   : > { %897 = shalt.err (!%p894_p6)
}
 0x4d3   : > { %s898_s9 = scalar_lea.hbm %s1246_s5, 16  ;;  %p1263_p1 = pmov %p1262_p10 }
 0x4d4   : > { %p899_p11 = scmp.ne.s32.totalorder %s1246_s5, %s898_s9  ;;  %p904_p13 = scmp.lt.u32.totalorder %s898_s9, %s1246_s5 }
 0x4d6   : > { %p900_p8 = pnand %p899_p11, %p1263_p1 }
 0x4d8   : > { %p901_p9 = pneg %p900_p8 }
 0x4da   : > { %p906_p3 = pnand %p904_p13, %p901_p9 }
 0x4dc   : > { %909 = shalt.err (!%p906_p3)
}
 0x4dd   : > { %p1264_p7 = pmov %p1263_p1  ;;  %p1265_p10 = pmov %p1263_p1 }
 0x4df   : > { %736 = dma.vmem_to_hbm [thread:$0]  (%p1264_p7), %s537_s28, 16, %s1246_s5, [#allocation10]  }
 0x4e0   : > { %935 = dma.done.wait (%p1265_p10), [#allocation10], 16   ;;  %p1266_p2 = pmov %p1263_p1 }
 0x4e2   : > { %937 = vsyncadd (%p1266_p2), [#allocation10], 4294967280 }
 0x4e3 PF: > { %s552_s24 = sand.u32 1, %s944_s18   ;;  %p1267_p5 = scmp.ne.s32.totalorder %s1251_s25, 0 }
 0x4e4   : > { %p1268_p0 = scmp.ge.s32.totalorder %s956_s21, 2  ;;  %s553_s12 = scalar_lea.sflag [#allocation5], %s552_s24 }
 0x4e6   : > { %p749_p12 = pnand %p1268_p0, %p1267_p5 }
 0x4e8   : > { %939 = dma.done.wait (!%p749_p12), %s553_s12, 128  }
 0x4e9   : > { %941 = vsyncadd (!%p749_p12), %s553_s12, 4294967168  ;;  %p21_p4 = scmp.ge.s32.totalorder %s1055_s30, 4   ;;  %s1269_s18 = smov %s948_s19 }
 0x4ea   : > { %s1270_s19 = smov %s952_s20  ;;  %s1271_s20 = smov %s1086_s8 }
 0x4eb   : > { %s1272_s21 = smov %s1055_s30  ;;  %23 = sbr.rel (!%p21_p4) target bundleno = 7 (0x7), region = 109 }
 0x4f2   :  { %565 = vsyncpa [#allocation4], 1 }
 0x4f3   :  { %567 = vsyncpa [#allocation4 + $0x1], 1 }
 0x4f4   :  { %568 = vsyncpa [#allocation7], 1 }
 0x4f5   :  { %569 = vsyncpa [#allocation5], 1 }
 0x4f6   :  { %571 = vsyncpa [#allocation5 + $0x1], 1 }
 0x4f7   :  { %572 = vsyncpa [#allocation10], 1 }

</bundles_post_ra>
